<compile_context>
chip_gen: v5e
topology: v5e:2x2
jax: 0.10.0
libtpu: 0.0.40
codegen_flags: <defaults>
</compile_context>

<pallas_src>
import functools

import jax
import jax.numpy as jnp
from jax import lax
from jax.experimental import pallas as pl
from jax.experimental.pallas import tpu as pltpu


def rel_pos(kernel_size):
    """Same as the PyTorch rel_pos: (1, 2, K, K) grid of coords in [-1, 1]."""
    lin = jnp.linspace(-1.0, 1.0, kernel_size)
    gi, gj = jnp.meshgrid(lin, lin, indexing="ij")  # torch.meshgrid default 'ij'
    return jnp.stack([gi, gj], axis=0)[None]        # (1, 2, K, K)


# --------------------------------------------------------------------------- #
# Pallas kernel 1: make_kernels — L1 point interpolation + small matmul.
# Emits the conv-ready (K*K, planes) tap table (tap-major, channels last).
# --------------------------------------------------------------------------- #
def _make_kernels_kernel(kc_ref, wc_ref, r_ref, w_ref, out_ref):
    # kc : (K*K, 2)      kernel coords, already permuted/flipped to final order
    # wc : (2, P)        point coords
    # r  : (1, P)        per-point radius
    # w  : (P, planes)   point -> channel weights
    # out: (K*K, planes) out[q, c] = sum_p w[p, c] * relu(1 - L1(kc[q]-wc[:,p])/r[p])
    kc = kc_ref[...]
    wc = wc_ref[...]
    dist = jnp.abs(kc[:, 0:1] - wc[0:1, :]) + jnp.abs(kc[:, 1:2] - wc[1:2, :])
    dm = jnp.maximum(1.0 - dist / r_ref[...], 0.0)
    out_ref[...] = jnp.dot(dm, w_ref[...], preferred_element_type=jnp.float32)


def make_kernels_pallas(weight_coord, kernel_coord, radius, weights,
                        planes, kernel_size, n_points):
    K = kernel_size
    kk = K * K
    # Fold the PyTorch `torch.flip(kernels.permute(0, 2, 1), dims=(1,))` into
    # the coordinate table: column (a*K + b) holds kernel_coord[:, b, K-1-a].
    kc3 = kernel_coord.reshape(2, K, K).astype(jnp.float32)
    kc_perm = jnp.flip(jnp.transpose(kc3, (0, 2, 1)), axis=1)      # (2, K, K)
    kc = kc_perm.reshape(2, kk).T                                  # (kk, 2)
    wc = weight_coord.reshape(n_points, 2).astype(jnp.float32).T   # (2, P)
    r = radius.reshape(1, n_points).astype(jnp.float32)            # (1, P)
    w = weights.reshape(planes, n_points).astype(jnp.float32).T    # (P, planes)

    # One-shot, tiny op: whole arrays in VMEM, no grid.
    return pl.pallas_call(
        _make_kernels_kernel,
        out_shape=jax.ShapeDtypeStruct((kk, planes), jnp.float32),
    )(kc, wc, r, w)


# --------------------------------------------------------------------------- #
# Pallas kernel 2: depthwise conv (stride=1, padding=K//2) — the hot path.
# NHWC, channels on lanes, one (batch, channel-block) tile per grid step.
# --------------------------------------------------------------------------- #
def _dwconv_kernel(x_ref, k_ref, o_ref, xp_ref, *, K, pad):
    # x_ref : (1, H, W, Cb)   unpadded NHWC input tile
    # k_ref : (K*K, Cb)       per-tap lane vectors (channels on lanes)
    # o_ref : (1, H, W, Cb)   output tile
    # xp_ref: (Hp, Wp, Cb)    VMEM scratch for the zero-padded input tile
    H, W, Cb = o_ref.shape[1], o_ref.shape[2], o_ref.shape[3]

    # Build the zero-padded tile in VMEM (avoids a jnp.pad HBM pre-pass).
    xp_ref[...] = jnp.zeros_like(xp_ref)
    xp_ref[pl.ds(pad, H), pl.ds(pad, W), :] = x_ref[0].astype(xp_ref.dtype)

    acc = jnp.zeros((H, W, Cb), jnp.float32)
    # TODO(synk): for very large kernels (e.g. K=51 -> 2601 taps) switch this
    # static unroll to a fori_loop / tap-tiled grid axis to bound compile time.
    for ki in range(K):
        for kj in range(K):
            w_tap = k_ref[pl.ds(ki * K + kj, 1), :]          # (1, Cb) lane vec
            acc = acc + xp_ref[pl.ds(ki, H), pl.ds(kj, W), :] * w_tap[None, :, :]
    o_ref[0] = acc.astype(o_ref.dtype)


def _pick_channel_block(C, H, W, K, budget_bytes=12 * 1024 * 1024):
    """Largest channel block that is either full C or a 128-multiple dividing C,
    keeping double-buffered tiles + padded scratch within a conservative VMEM
    budget (fits the default scoped limit on v5e/v6e/v7x)."""
    p = K // 2
    Hp, Wp = H + 2 * p, W + 2 * p

    def tile_bytes(cb):
        # 2x (in + out) double-buffered tiles + padded scratch + 2x weight tile
        return 4 * (4 * H * W * cb + Hp * Wp * cb + 2 * K * K * cb)

    if tile_bytes(C) <= budget_bytes:
        return C
    for cb in (1024, 896, 768, 640, 512, 384, 256, 128):
        if C % cb == 0 and tile_bytes(cb) <= budget_bytes:
            return cb
    return C


def depthwise_conv2d_pallas(x, k_qc, kernel_size):
    # x: (N, C, H, W); k_qc: (K*K, C) tap-major weights (channels on lanes).
    N, C, H, W = x.shape
    K = kernel_size
    p = K // 2
    Hp, Wp = H + 2 * p, W + 2 * p
    Cb = _pick_channel_block(C, H, W, K)

    x_nhwc = jnp.transpose(x, (0, 2, 3, 1))      # one layout change in wrapper

    out_nhwc = pl.pallas_call(
        functools.partial(_dwconv_kernel, K=K, pad=p),
        out_shape=jax.ShapeDtypeStruct((N, H, W, C), x.dtype),
        grid=(N, C // Cb),
        in_specs=[
            pl.BlockSpec((1, H, W, Cb), lambda n, c: (n, 0, 0, c)),
            pl.BlockSpec((K * K, Cb), lambda n, c: (0, c)),
        ],
        out_specs=pl.BlockSpec((1, H, W, Cb), lambda n, c: (n, 0, 0, c)),
        scratch_shapes=[pltpu.VMEM((Hp, Wp, Cb), jnp.float32)],
        compiler_params=pltpu.CompilerParams(
            dimension_semantics=("parallel", "parallel")),
    )(x_nhwc, k_qc.astype(jnp.float32))

    return jnp.transpose(out_nhwc, (0, 3, 1, 2))


# --------------------------------------------------------------------------- #
# SMPConv forward (parameters initialized deterministically in-script)
# --------------------------------------------------------------------------- #
def smp_conv_init(key, planes, kernel_size, n_points):
    k1, k2 = jax.random.split(key, 2)
    # trunc_normal_(std=0.2, a=-1, b=1)
    weight_coord = 0.2 * jax.random.truncated_normal(
        k1, -5.0, 5.0, (1, n_points, 2), jnp.float32)
    # trunc_normal_(std=0.02)  (default truncation at +-2 std)
    weights = 0.02 * jax.random.truncated_normal(
        k2, -2.0, 2.0, (1, planes, n_points), jnp.float32)
    radius = jnp.full((1, n_points, 1, 1), 2.0 * (2.0 / kernel_size), jnp.float32)
    kernel_coord = rel_pos(kernel_size)
    return dict(weight_coord=weight_coord, weights=weights, radius=radius,
                kernel_coord=kernel_coord, planes=planes,
                kernel_size=kernel_size, n_points=n_points)


def smp_conv_forward(params, x):
    k_qc = make_kernels_pallas(
        params["weight_coord"], params["kernel_coord"], params["radius"],
        params["weights"], params["planes"], params["kernel_size"],
        params["n_points"])                                    # (K*K, planes)
    out = depthwise_conv2d_pallas(x, k_qc, params["kernel_size"])
    return out, k_qc


# --------------------------------------------------------------------------- #
if __name__ == "__main__":
    planes, kernel_size, n_points = 4, 5, 4
    N, H, W = 2, 16, 16

    key = jax.random.PRNGKey(0)
    kp, kx = jax.random.split(key)
    params = smp_conv_init(kp, planes, kernel_size, n_points)
    x = jax.random.normal(kx, (N, planes, H, W), jnp.float32)

    out, k_qc = smp_conv_forward(params, x)
    out = jax.block_until_ready(out)

    # ---- pure-JAX reference (mirrors the PyTorch code path) for sanity ----
    K = kernel_size
    kc = params["kernel_coord"].reshape(1, 2, -1)                       # (1,2,KK)
    diff = params["weight_coord"][:, :, None, :] \
        - jnp.transpose(kc, (0, 2, 1))[:, None, :, :]                   # (1,P,KK,2)
    dist = jnp.sum(jnp.abs(diff), axis=-1)                              # (1,P,KK)
    dm = jax.nn.relu(1.0 - dist / params["radius"].reshape(1, n_points, 1))
    kern_ref = (params["weights"] @ dm).reshape(planes, K, K)
    kern_ref = jnp.flip(jnp.transpose(kern_ref, (0, 2, 1)), axis=1)
    p = K // 2
    ref = lax.conv_general_dilated(
        x, kern_ref[:, None, :, :], (1, 1), [(p, p), (p, p)],
        dimension_numbers=("NCHW", "OIHW", "NCHW"),
        feature_group_count=planes)

    kern_pallas = jnp.transpose(k_qc).reshape(planes, K, K)
    assert jnp.allclose(kern_pallas, kern_ref, atol=1e-5, rtol=1e-5), \
        "kernel-gen mismatch"
    assert jnp.allclose(out, ref, atol=1e-4, rtol=1e-4), "depthwise-conv mismatch"
    assert out.shape == (N, planes, H, W) and out.dtype == jnp.float32

    print("KERNEL_OK")
</pallas_src>

<mosaic_0001>
module attributes {stable_mosaic.version = 11 : i64} {
  func.func @_make_kernels_kernel(%arg0: memref<25x2xf32, #tpu.memory_space<vmem>>, %arg1: memref<2x4xf32, #tpu.memory_space<vmem>>, %arg2: memref<1x4xf32, #tpu.memory_space<vmem>>, %arg3: memref<4x4xf32, #tpu.memory_space<vmem>>, %arg4: memref<25x4xf32, #tpu.memory_space<vmem>>) attributes {dimension_semantics = [], scalar_prefetch = 0 : i64, scratch_operands = 0 : i64, tpu.core_type = #tpu.core_type<tc>} {
    %c0 = arith.constant 0 : index
    %c0_0 = arith.constant 0 : index
    %0 = vector.load %arg0[%c0, %c0_0] : memref<25x2xf32, #tpu.memory_space<vmem>>, vector<25x2xf32>
    %c0_1 = arith.constant 0 : index
    %c0_2 = arith.constant 0 : index
    %1 = vector.load %arg1[%c0_1, %c0_2] : memref<2x4xf32, #tpu.memory_space<vmem>>, vector<2x4xf32>
    %2 = vector.extract_strided_slice %0 {offsets = [0, 0], sizes = [25, 1], strides = [1, 1]} : vector<25x2xf32> to vector<25x1xf32>
    %3 = vector.extract_strided_slice %1 {offsets = [0, 0], sizes = [1, 4], strides = [1, 1]} : vector<2x4xf32> to vector<1x4xf32>
    %4 = vector.broadcast %2 : vector<25x1xf32> to vector<25x4xf32>
    %5 = vector.broadcast %3 : vector<1x4xf32> to vector<25x4xf32>
    %6 = arith.subf %4, %5 : vector<25x4xf32>
    %7 = math.absf %6 : vector<25x4xf32>
    %8 = vector.extract_strided_slice %0 {offsets = [0, 1], sizes = [25, 1], strides = [1, 1]} : vector<25x2xf32> to vector<25x1xf32>
    %9 = vector.extract_strided_slice %1 {offsets = [1, 0], sizes = [1, 4], strides = [1, 1]} : vector<2x4xf32> to vector<1x4xf32>
    %10 = vector.broadcast %8 : vector<25x1xf32> to vector<25x4xf32>
    %11 = vector.broadcast %9 : vector<1x4xf32> to vector<25x4xf32>
    %12 = arith.subf %10, %11 : vector<25x4xf32>
    %13 = math.absf %12 : vector<25x4xf32>
    %14 = arith.addf %7, %13 : vector<25x4xf32>
    %c0_3 = arith.constant 0 : index
    %c0_4 = arith.constant 0 : index
    %15 = vector.load %arg2[%c0_3, %c0_4] : memref<1x4xf32, #tpu.memory_space<vmem>>, vector<1x4xf32>
    %16 = vector.broadcast %15 : vector<1x4xf32> to vector<25x4xf32>
    %17 = arith.divf %14, %16 : vector<25x4xf32>
    %cst = arith.constant 1.000000e+00 : f32
    %18 = vector.broadcast %cst : f32 to vector<25x4xf32>
    %19 = arith.subf %18, %17 : vector<25x4xf32>
    %cst_5 = arith.constant 0.000000e+00 : f32
    %20 = vector.broadcast %cst_5 : f32 to vector<25x4xf32>
    %21 = arith.maximumf %19, %20 : vector<25x4xf32>
    %c0_6 = arith.constant 0 : index
    %c0_7 = arith.constant 0 : index
    %22 = vector.load %arg3[%c0_6, %c0_7] : memref<4x4xf32, #tpu.memory_space<vmem>>, vector<4x4xf32>
    %cst_8 = arith.constant dense<0.000000e+00> : vector<25x4xf32>
    %23 = tpu.matmul %21, %22, %cst_8 {dimension_numbers = #tpu.dot_dimension_numbers<[1], [0], [0], [1], [0, 0, 1, 1], [], []>} : vector<25x4xf32>, vector<4x4xf32>, vector<25x4xf32> -> vector<25x4xf32>
    %c0_9 = arith.constant 0 : index
    %c0_10 = arith.constant 0 : index
    %24 = vector.load %arg4[%c0_9, %c0_10] : memref<25x4xf32, #tpu.memory_space<vmem>>, vector<25x4xf32>
    tpu.vector_store %arg4[%c0_9, %c0_10], %23 {strides = array<i32>} : memref<25x4xf32, #tpu.memory_space<vmem>>, vector<25x4xf32>,
    return
  }
}

</mosaic_0001>

<bundles_post_ra>
// kernel: tpu_custom_call.1
= control target key start
LH: loop header
LB: loop body
LE: loop exit
PB: predicated region body
PF: predicated region fallthrough
CT: control target
= control target key end

     0   :  { %v183_v0 = vmov 1   ;;  %v184_v1 = vmov 0   ;;  %vm124_vm0 = vcmask 1043456   ;;  %vm111_vm5 = vcmask 31744   ;;  %s250_s0 = inlined_call_operand.vmem [shape: f32[25,2], index: 0, kind: input, shape index: {}]   ;;  %s251_s2 = inlined_call_operand.vmem [shape: f32[1,4], index: 2, kind: input, shape index: {}]   ;;  %s252_s3 = inlined_call_operand.vmem [shape: f32[4,4], index: 3, kind: input, shape index: {}]   ;;  %s253_s1 = inlined_call_operand.vmem [shape: f32[2,4], index: 1, kind: input, shape index: {}]   ;;  %s254_s4 = inlined_call_operand.vmem [shape: f32[25,4], index: 4, kind: output, shape index: {}]  }
   0x1   :  { %177 = vset.pattern.permute.xlu1 %v183_v0  ;;  %176 = vset.pattern.permute.xlu0 %v184_v1  ;;  %v19_v2 = vld [vmem:[%s250_s0 + $0x10] sm:$0xff]  ;;  %v17_v3 = vld [vmem:[%s250_s0] sm:$0xff]  ;;  %v20_v4 = vld [vmem:[%s250_s0 + $0x18] sm:$0x1]  ;;  %vm160_vm6 = vcmask 24576  }
   0x2   :  { %60 = vperm.xlu1 %177, %v19_v2   ;;  %34 = vperm.xlu0 %176, %v19_v2   ;;  %v18_v5 = vld [vmem:[%s250_s0 + $0x8] sm:$0xff]  ;;  %v180_v6 = vld [vmem:[%s251_s2] ss:$0 sm:$0xff] }
   0x3   :  { %178 = vset.pattern.permute.xlu2 %v184_v1  ;;  %181 = vrcp.f32 %v180_v6  ;;  %v110_v7 = vld [vmem:[%s252_s3] sm:$0xf]  ;;  %vm89_vm1 = vweird.f32 %v180_v6  ;;  %v95_v13 = vand.u32 2147483648, %v180_v6  ;;  %v93_v17 = vand.u32 2147483647, %v180_v6 }
   0x4   :  { %24 = vperm.xlu2 %178, %v17_v3   ;;  %172 = vmatpush.msk.msra.mxu2 %vm124_vm0, %v110_v7  ;;  %v21_v12 = vld [vmem:[%s253_s1] sm:$0x3] }
   0x5   :  { %173 = vmatpush.msk.msra.mxu3 %vm124_vm0, %v110_v7  ;;  %171 = vmatpush.msk.msra.mxu1 %vm124_vm0, %v110_v7  ;;  %v67_v14 = vperm.slane %v21_v12, 1  ;;  %v42_v15 = vperm.slane %v21_v12, 0  ;;  %v96_v20 = vor.u32 1.1754944e-38, %v95_v13  ;;  %vm94_vm4 = vcmp.eq.f32.partialorder %v93_v17, 8.507059e+37 }
   0x6   :  { %166 = vmatpush.msk.msra.mxu0 %vm124_vm0, %v110_v7 }
   0x9   :  { %v182_v8 = vpop.eup %181 }
   0xa   :  { %64 = vperm.xlu1 %177, %v20_v4   ;;  %39 = vperm.xlu0 %176, %v20_v4   ;;  %v85_v9 = vmul.f32 %v182_v8, %v180_v6  ;;  %vm90_vm2 = vweird.f32 %v182_v8 }
   0xb   :  { %vm91_vm3 = vmor %vm89_vm1, %vm90_vm2 }
   0xc   :  { %29 = vperm.xlu2 %178, %v18_v5   ;;  %v86_v10 = vsub.f32 1.0, %v85_v9 }
   0xe   :  { %v87_v11 = vmul.f32 %v182_v8, %v86_v10 }
  0x10   :  { %v88_v16 = vadd.f32 %v182_v8, %v87_v11 }
  0x12   :  { %179 = vset.pattern.permute.xlu0 %v183_v0  ;;  %56 = vperm.xlu1 %177, %v18_v5   ;;  %v92_v23 = vsel %vm91_vm3, %v182_v8, %v88_v16 }
  0x13   :  { %52 = vperm.xlu0 %179, %v17_v3   ;;  %v97_v27 = vsel %vm94_vm4, %v96_v20, %v92_v23 }
  0x5e   :  { %v25_v24 = vpop.permute.xlu2 %24 }
  0x5f   :  { %v43_v42 = vsub.f32 %v25_v24, %v42_v15 }
  0x61   :  { %v47_v51 = vand.u32 2147483647, %v43_v42 }
  0x66   :  { %v30_v38 = vpop.permute.xlu2 %29 }
  0x67   :  { %v44_v40 = vsub.f32 %v30_v38, %v42_v15 }
  0x69   :  { %v48_v48 = vand.u32 2147483647, %v44_v40 }
  0x74   :  { %v61_v18 = vpop.permute.xlu1 %60  ;;  %v35_v19 = vpop.permute.xlu0 %34 }
  0x75   :  { %v70_v21 = vsub.f32 %v61_v18, %v67_v14  ;;  %v45_v22 = vsub.f32 %v35_v19, %v42_v15 }
  0x77   :  { %v74_v25 = vand.u32 2147483647, %v70_v21  ;;  %v49_v26 = vand.u32 2147483647, %v45_v22 }
  0x79   :  { %v78_v28 = vadd.f32 %v74_v25, %v49_v26 }
  0x7b   :  { %v100_v29 = vmul.f32 %v97_v27, %v78_v28 }
  0x7c   :  { %v65_v30 = vpop.permute.xlu1 %64  ;;  %v40_v31 = vpop.permute.xlu0 %39 }
  0x7d   :  { %v71_v32 = vsub.f32 %v65_v30, %v67_v14  ;;  %v46_v33 = vsub.f32 %v40_v31, %v42_v15  ;;  %v104_v34 = vsub.f32 1.0, %v100_v29 }
  0x7f   :  { %v75_v35 = vand.u32 2147483647, %v71_v32  ;;  %v50_v36 = vand.u32 2147483647, %v46_v33  ;;  %v108_v37 = vmax.f32 %v104_v34, 0.0 }
  0x81   :  { %v79_v39 = vadd.f32 %v75_v35, %v50_v36  ;;  %169 = vmatmul.msk.f32.vlgmr.msra.gmra.mxu2 %vm111_vm5, %v108_v37 }
  0x83   :  { %v101_v41 = vmul.f32 %v97_v27, %v79_v39 }
  0x84   :  { %v57_v43 = vpop.permute.xlu1 %56 }
  0x85   :  { %v69_v44 = vsub.f32 %v57_v43, %v67_v14  ;;  %v53_v45 = vpop.permute.xlu0 %52  ;;  %v105_v46 = vsub.f32 1.0, %v101_v41 }
  0x86   :  { %v68_v47 = vsub.f32 %v53_v45, %v67_v14 }
  0x87   :  { %v73_v49 = vand.u32 2147483647, %v69_v44  ;;  %v109_v50 = vmax.f32 %v105_v46, 0.0 }
  0x88   :  { %v72_v52 = vand.u32 2147483647, %v68_v47 }
  0x89   :  { %v77_v53 = vadd.f32 %v73_v49, %v48_v48  ;;  %170 = vmatmul.msk.f32.vlgmr.msra.gmra.mxu3 %vm111_vm5, %v109_v50 }
  0x8a   :  { %v76_v54 = vadd.f32 %v72_v52, %v47_v51 }
  0x8b   :  { %v99_v55 = vmul.f32 %v97_v27, %v77_v53 }
  0x8c   :  { %v98_v56 = vmul.f32 %v97_v27, %v76_v54 }
  0x8d   :  { %v103_v57 = vsub.f32 1.0, %v99_v55 }
  0x8e   :  { %v102_v58 = vsub.f32 1.0, %v98_v56 }
  0x8f   :  { %v107_v59 = vmax.f32 %v103_v57, 0.0 }
  0x90   :  { %v106_v60 = vmax.f32 %v102_v58, 0.0 }
  0x91   :  { %168 = vmatmul.msk.f32.vlgmr.msra.gmra.mxu1 %vm111_vm5, %v107_v59 }
  0x92   :  { %167 = vmatmul.msk.f32.vlgmr.msra.gmra.mxu0 %vm111_vm5, %v106_v60 }
 0x104   :  { %v151_v61 = vpop.f32.mrf.mxu2 }
 0x105   :  { %159 = vst.msk [vmem:[%s254_s4 + $0x10] sm:$0xff] %vm111_vm5, %v151_v61 }
 0x10c   :  { %v154_v62 = vpop.f32.mrf.mxu3 }
 0x10d   :  { %161 = vst.msk [vmem:[%s254_s4 + $0x18] sm:$0x1] %vm160_vm6, %v154_v62 }
 0x10e   :  { %v148_v63 = vpop.f32.mrf.mxu1 }
 0x10f   :  { %158 = vst.msk [vmem:[%s254_s4 + $0x8] sm:$0xff] %vm111_vm5, %v148_v63  ;;  %v145_v0 = vpop.f32.mrf.mxu0 }
 0x110   :  { %157 = vst.msk [vmem:[%s254_s4] sm:$0xff] %vm111_vm5, %v145_v0 }

</bundles_post_ra>
